<compile_context>
chip_gen: v6e
topology: v6e:2x2x1
jax: 0.10.0
libtpu: 0.0.40
codegen_flags: <defaults>
</compile_context>

<pallas_src>
import functools

import jax
import jax.numpy as jnp
from jax.experimental import pallas as pl
from jax.experimental.pallas import tpu as pltpu


def _round_up(n, m):
    return ((n + m - 1) // m) * m


# --------------------------------- kernel ----------------------------------

def _stack_taps(slab, K, dilation, T):
    """slab: (C, s+T) where s = (K-1)*dilation columns of causal left context.
    Returns (K*C, T); tap-k block is slab[:, k*d : k*d + T] (static slices; the
    context columns carry the true history, zero for the first tile)."""
    if K == 1:
        return slab
    parts = [slab[:, k * dilation: k * dilation + T] for k in range(K)]
    return jnp.concatenate(parts, axis=0)


def _tcn_fused_kernel(x_ref, *rest, K, layers, compute_dtype, num_param_refs):
    """Entire TCN for one (batch, time-tile) grid step; activations stay on-chip.

    x_ref : (1, C0p, T) input tile in (C, L) layout.
    rest  : per-layer param refs, then out_ref (1, Clastp, T), then streaming
            state scratch refs (two per layer when K > 1).
            per layer params: w1 (coutp, K*cinp), b1 (coutp, 1),
                              w2 (coutp, K*coutp), b2 (coutp, 1),
                              [wd (coutp, cinp), bd (coutp, 1)] if c_in != c_out.
    layers: static tuple of (dilation, has_downsample).
    """
    param_refs = rest[:num_param_refs]
    out_ref = rest[num_param_refs]
    state_refs = rest[num_param_refs + 1:]

    t = pl.program_id(1)

    if state_refs:
        @pl.when(t == 0)
        def _():
            # New sequence: streaming states = causal zero padding.
            for s_ref in state_refs:
                s_ref[...] = jnp.zeros_like(s_ref)

    h = x_ref[0].astype(jnp.float32)                      # (C0p, T) f32
    T_len = h.shape[1]
    pi = 0
    si = 0
    for dilation, has_downsample in layers:
        w1 = param_refs[pi][...]
        b1 = param_refs[pi + 1][...]
        w2 = param_refs[pi + 2][...]
        b2 = param_refs[pi + 3][...]
        pi += 4
        if has_downsample:
            wd = param_refs[pi][...]
            bd = param_refs[pi + 1][...]
            pi += 2

        # Cast once to compute dtype BEFORE tap stacking (halves slice/concat
        # traffic and vreg pressure of the largest live tensors).
        hc = h.astype(compute_dtype)

        # conv1 (causal, dilated) + bias + ReLU.  dropout1: identity (inference).
        if K > 1:
            st1 = state_refs[si]; si += 1
            slab1 = jnp.concatenate([st1[...], hc], axis=1)
            st1[...] = slab1[:, T_len:]                   # carry last s columns
        else:
            slab1 = hc
        xs = _stack_taps(slab1, K, dilation, T_len)
        h1 = jnp.maximum(
            jnp.dot(w1, xs, preferred_element_type=jnp.float32) + b1, 0.0)

        # conv2 (causal, dilated) + bias + ReLU.  dropout2: identity (inference).
        h1c = h1.astype(compute_dtype)
        if K > 1:
            st2 = state_refs[si]; si += 1
            slab2 = jnp.concatenate([st2[...], h1c], axis=1)
            st2[...] = slab2[:, T_len:]
        else:
            slab2 = h1c
        hs = _stack_taps(slab2, K, dilation, T_len)
        h2 = jnp.maximum(
            jnp.dot(w2, hs, preferred_element_type=jnp.float32) + b2, 0.0)

        # residual (1x1 conv if channel count changes) + final ReLU (f32)
        if has_downsample:
            res = jnp.dot(wd, hc, preferred_element_type=jnp.float32) + bd
        else:
            res = h
        h = jnp.maximum(h2 + res, 0.0)

    out_ref[0] = h.astype(out_ref.dtype)


# ------------------------------- host wrapper -------------------------------

def _pack_conv_weight(w_ock, c_in_p, c_out_p, dtype):
    """(C_out, C_in, K) torch layout -> (C_out_p, K*C_in_p), tap-major columns."""
    c_out, c_in, K = w_ock.shape
    w = jnp.pad(w_ock, ((0, c_out_p - c_out), (0, c_in_p - c_in), (0, 0)))
    w = jnp.transpose(w, (0, 2, 1)).reshape(c_out_p, K * c_in_p)
    return w.astype(dtype)


def _pack_bias(b, c_out_p):
    return jnp.pad(b, (0, c_out_p - b.shape[0])).reshape(c_out_p, 1).astype(jnp.float32)


def _choose_time_tile(L, c_max_p, K, vmem_budget_bytes=8 << 20):
    """Largest lane-dense time tile whose per-layer live set fits a small VMEM
    budget (leaves plenty of headroom even on v7x's 64 MiB physical VMEM)."""
    # rough live bytes per time column: stacked taps (compute dtype, x2 convs)
    # + a handful of f32 activation rows.
    bytes_per_col = 2 * K * c_max_p * 2 + 6 * c_max_p * 4
    t_budget = (vmem_budget_bytes // max(bytes_per_col, 1)) // 128 * 128
    T = max(128, min(2048, t_budget))
    Lp = _round_up(max(L, 128), 128)
    if Lp <= T:
        return Lp, Lp
    Lp = _round_up(Lp, T)
    return T, Lp


def tcn_forward(x_bcl, params, *, kernel_size, compute_dtype=jnp.bfloat16):
    """x_bcl: (B, C, L) like PyTorch NCL.  Returns (B, C_last, L) float32."""
    B, C_in, L = x_bcl.shape
    K = kernel_size
    io_dtype = jnp.dtype(compute_dtype)
    # bf16 packs 2 rows per sublane -> pad channels to 16; f32 -> 8.
    c_round = 16 if io_dtype == jnp.dtype(jnp.bfloat16) else 8

    c_prev, c_prev_p = C_in, _round_up(C_in, c_round)
    c_max_p = c_prev_p
    for p in params:
        c_max_p = max(c_max_p, _round_up(p["b1"].shape[0], c_round))

    T, Lp = _choose_time_tile(L, c_max_p, K)
    n_time_tiles = Lp // T

    x_p = jnp.pad(x_bcl.astype(jnp.float32),
                  ((0, 0), (0, c_prev_p - C_in), (0, Lp - L))).astype(io_dtype)

    flat_args = [x_p]
    in_specs = [pl.BlockSpec((1, c_prev_p, T), lambda b, t: (b, 0, t))]
    scratch_shapes = []
    layer_meta = []
    for i, p in enumerate(params):
        dilation = 2 ** i
        c_out = p["b1"].shape[0]
        c_out_p = _round_up(c_out, c_round)
        has_downsample = p["wd"] is not None

        layer_args = [
            _pack_conv_weight(p["w1"], c_prev_p, c_out_p, compute_dtype),
            _pack_bias(p["b1"], c_out_p),
            _pack_conv_weight(p["w2"], c_out_p, c_out_p, compute_dtype),
            _pack_bias(p["b2"], c_out_p),
        ]
        if has_downsample:
            wd = jnp.pad(p["wd"], ((0, c_out_p - c_out), (0, c_prev_p - c_prev)))
            layer_args += [wd.astype(compute_dtype), _pack_bias(p["bd"], c_out_p)]

        for a in layer_args:
            flat_args.append(a)
            in_specs.append(pl.BlockSpec(a.shape, lambda b, t: (0, 0)))

        if K > 1:
            s = (K - 1) * dilation
            scratch_shapes.append(pltpu.VMEM((c_prev_p, s), compute_dtype))
            scratch_shapes.append(pltpu.VMEM((c_out_p, s), compute_dtype))

        layer_meta.append((dilation, has_downsample))
        c_prev, c_prev_p = c_out, c_out_p

    num_param_refs = len(flat_args) - 1
    kernel = functools.partial(
        _tcn_fused_kernel, K=K, layers=tuple(layer_meta),
        compute_dtype=compute_dtype, num_param_refs=num_param_refs)

    # Explicit scoped-VMEM limit: defaults (16/32/32 MiB) are too small to let
    # the compiler pick good buffering; stay well under v7x's 64 MiB physical.
    try:
        vmem_limit = int(min(100 * (1 << 20),
                             pltpu.get_tpu_info().vmem_capacity_bytes * 3 // 4))
    except Exception:
        vmem_limit = 48 * (1 << 20)

    out_full = pl.pallas_call(
        kernel,
        out_shape=jax.ShapeDtypeStruct((B, c_prev_p, Lp), io_dtype),
        grid_spec=pltpu.PrefetchScalarGridSpec(
            num_scalar_prefetch=0,
            grid=(B, n_time_tiles),
            in_specs=in_specs,
            out_specs=pl.BlockSpec((1, c_prev_p, T), lambda b, t: (b, 0, t)),
            scratch_shapes=scratch_shapes),
        compiler_params=pltpu.CompilerParams(
            dimension_semantics=("parallel", "arbitrary"),
            vmem_limit_bytes=vmem_limit),
    )(*flat_args)

    return out_full[:, :c_prev, :L].astype(jnp.float32)


# --------------------- parameter construction (host glue) -------------------

def _weight_norm(v, g):
    # PyTorch weight_norm, dim=0: w = g * v / ||v||, norm over (c_in, K) per out channel.
    norm = jnp.sqrt(jnp.sum(v * v, axis=(1, 2), keepdims=True))
    return g[:, None, None] * v / norm


def init_tcn_params(key, num_inputs, channels, kernel_size):
    """Deterministic init matching the PyTorch module's __init__ semantics."""
    params = []
    for i, c_out in enumerate(channels):
        c_in = num_inputs if i == 0 else channels[i - 1]
        key, k1, k2, k3, k4, k5, k6 = jax.random.split(key, 7)

        v1 = 0.01 * jax.random.normal(k1, (c_out, c_in, kernel_size), jnp.float32)
        g1 = jnp.sqrt(jnp.sum(v1 * v1, axis=(1, 2)))       # weight_norm g init = ||v||
        w1 = _weight_norm(v1, g1)                           # == v1 at init
        bound1 = 1.0 / float(c_in * kernel_size) ** 0.5
        b1 = jax.random.uniform(k2, (c_out,), jnp.float32, -bound1, bound1)

        v2 = 0.01 * jax.random.normal(k3, (c_out, c_out, kernel_size), jnp.float32)
        g2 = jnp.sqrt(jnp.sum(v2 * v2, axis=(1, 2)))
        w2 = _weight_norm(v2, g2)
        bound2 = 1.0 / float(c_out * kernel_size) ** 0.5
        b2 = jax.random.uniform(k4, (c_out,), jnp.float32, -bound2, bound2)

        if c_in != c_out:
            wd = 0.01 * jax.random.normal(k5, (c_out, c_in), jnp.float32)
            boundd = 1.0 / float(c_in) ** 0.5
            bd = jax.random.uniform(k6, (c_out,), jnp.float32, -boundd, boundd)
        else:
            wd, bd = None, None

        params.append(dict(w1=w1, b1=b1, w2=w2, b2=b2, wd=wd, bd=bd))
    return params


# ---------------------------- pure-JAX reference ----------------------------

def _causal_conv1d_ref(x, w, b, dilation):
    # x: (B, C_in, L), w: (C_out, C_in, K), b: (C_out,)
    B, _, L = x.shape
    K = w.shape[-1]
    pad = (K - 1) * dilation
    xp = jnp.pad(x, ((0, 0), (0, 0), (pad, 0)))
    y = jnp.zeros((B, w.shape[0], L), jnp.float32)
    for k in range(K):
        y = y + jnp.einsum("oc,bcl->bol", w[:, :, k],
                           xp[:, :, k * dilation:k * dilation + L],
                           precision=jax.lax.Precision.HIGHEST)
    return y + b[None, :, None]


def tcn_reference(x_bcl, params, *, kernel_size):
    h = x_bcl.astype(jnp.float32)
    for i, p in enumerate(params):
        d = 2 ** i
        out = jax.nn.relu(_causal_conv1d_ref(h, p["w1"], p["b1"], d))
        out = jax.nn.relu(_causal_conv1d_ref(out, p["w2"], p["b2"], d))
        if p["wd"] is not None:
            res = jnp.einsum("oc,bcl->bol", p["wd"], h,
                             precision=jax.lax.Precision.HIGHEST) + p["bd"][None, :, None]
        else:
            res = h
        h = jax.nn.relu(out + res)
    return h


# ----------------------------------- main -----------------------------------

if __name__ == "__main__":
    key = jax.random.PRNGKey(0)
    B, C_in, L = 2, 8, 16
    channels = [16, 16]        # block 0 has a 1x1 downsample (8->16), block 1 does not
    kernel_size = 2

    kx, kp = jax.random.split(key)
    x = jax.random.normal(kx, (B, C_in, L), jnp.float32)
    params = init_tcn_params(kp, C_in, channels, kernel_size)

    y_ref = tcn_reference(x, params, kernel_size=kernel_size)

    # f32-operand path: checks the fused-kernel math (incl. streaming state)
    # against the JAX reference.
    y_f32 = tcn_forward(x, params, kernel_size=kernel_size, compute_dtype=jnp.float32)
    jax.block_until_ready(y_f32)
    assert y_f32.shape == (B, channels[-1], L)
    assert jnp.allclose(y_f32, y_ref, atol=1e-2, rtol=1e-2), "f32 kernel mismatch vs reference"

    # Default fast path: bf16 I/O + bf16 MXU operands, f32 accumulation / elementwise.
    y = tcn_forward(x, params, kernel_size=kernel_size)
    jax.block_until_ready(y)
    assert y.shape == (B, channels[-1], L)
    assert jnp.allclose(y, y_ref, atol=1e-2, rtol=1e-2), "bf16 kernel mismatch vs reference"

    print("KERNEL_OK")
</pallas_src>

<mosaic_0001>
module attributes {stable_mosaic.version = 11 : i64} {
  func.func @_tcn_fused_kernel(%arg0: i32, %arg1: i32, %arg2: memref<1x8x128xf32, #tpu.memory_space<vmem>>, %arg3: memref<16x16xf32, #tpu.memory_space<vmem>>, %arg4: memref<16x1xf32, #tpu.memory_space<vmem>>, %arg5: memref<16x32xf32, #tpu.memory_space<vmem>>, %arg6: memref<16x1xf32, #tpu.memory_space<vmem>>, %arg7: memref<16x8xf32, #tpu.memory_space<vmem>>, %arg8: memref<16x1xf32, #tpu.memory_space<vmem>>, %arg9: memref<16x32xf32, #tpu.memory_space<vmem>>, %arg10: memref<16x1xf32, #tpu.memory_space<vmem>>, %arg11: memref<16x32xf32, #tpu.memory_space<vmem>>, %arg12: memref<16x1xf32, #tpu.memory_space<vmem>>, %arg13: memref<1x16x128xf32, #tpu.memory_space<vmem>>, %arg14: memref<8x1xf32, #tpu.memory_space<vmem>>, %arg15: memref<16x1xf32, #tpu.memory_space<vmem>>, %arg16: memref<16x2xf32, #tpu.memory_space<vmem>>, %arg17: memref<16x2xf32, #tpu.memory_space<vmem>>) attributes {dimension_semantics = [#tpu.dimension_semantics<parallel>, #tpu.dimension_semantics<arbitrary>], iteration_bounds = array<i64: 2, 1>, scalar_prefetch = 0 : i64, scratch_operands = 4 : i64, tpu.core_type = #tpu.core_type<tc>, window_params = [{transform_indices = @transform_0, window_bounds = array<i64: 1, 8, 128>}, {pipeline_mode = #tpu.pipeline_mode<synchronous>, transform_indices = @transform_1, window_bounds = array<i64: 16, 16>}, {pipeline_mode = #tpu.pipeline_mode<synchronous>, transform_indices = @transform_2, window_bounds = array<i64: 16, 1>}, {pipeline_mode = #tpu.pipeline_mode<synchronous>, transform_indices = @transform_3, window_bounds = array<i64: 16, 32>}, {pipeline_mode = #tpu.pipeline_mode<synchronous>, transform_indices = @transform_4, window_bounds = array<i64: 16, 1>}, {pipeline_mode = #tpu.pipeline_mode<synchronous>, transform_indices = @transform_5, window_bounds = array<i64: 16, 8>}, {pipeline_mode = #tpu.pipeline_mode<synchronous>, transform_indices = @transform_6, window_bounds = array<i64: 16, 1>}, {pipeline_mode = #tpu.pipeline_mode<synchronous>, transform_indices = @transform_7, window_bounds = array<i64: 16, 32>}, {pipeline_mode = #tpu.pipeline_mode<synchronous>, transform_indices = @transform_8, window_bounds = array<i64: 16, 1>}, {pipeline_mode = #tpu.pipeline_mode<synchronous>, transform_indices = @transform_9, window_bounds = array<i64: 16, 32>}, {pipeline_mode = #tpu.pipeline_mode<synchronous>, transform_indices = @transform_10, window_bounds = array<i64: 16, 1>}, {transform_indices = @transform_11, window_bounds = array<i64: 1, 16, 128>}]} {
    %c0_i32 = arith.constant 0 : i32
    %0 = arith.cmpi eq, %arg1, %c0_i32 : i32
    %1 = arith.extui %0 : i1 to i32
    %c0_i32_0 = arith.constant 0 : i32
    %2 = arith.cmpi ne, %1, %c0_i32_0 : i32
    scf.if %2 {
      %cst_52 = arith.constant 0.000000e+00 : f32
      %75 = vector.broadcast %cst_52 : f32 to vector<8x1xf32>
      %c0_53 = arith.constant 0 : index
      %c0_54 = arith.constant 0 : index
      %76 = vector.load %arg14[%c0_53, %c0_54] : memref<8x1xf32, #tpu.memory_space<vmem>>, vector<8x1xf32>
      tpu.vector_store %arg14[%c0_53, %c0_54], %75 {strides = array<i32>} : memref<8x1xf32, #tpu.memory_space<vmem>>, vector<8x1xf32>,
      %cst_55 = arith.constant 0.000000e+00 : f32
      %77 = vector.broadcast %cst_55 : f32 to vector<16x1xf32>
      %c0_56 = arith.constant 0 : index
      %c0_57 = arith.constant 0 : index
      %78 = vector.load %arg15[%c0_56, %c0_57] : memref<16x1xf32, #tpu.memory_space<vmem>>, vector<16x1xf32>
      tpu.vector_store %arg15[%c0_56, %c0_57], %77 {strides = array<i32>} : memref<16x1xf32, #tpu.memory_space<vmem>>, vector<16x1xf32>,
      %cst_58 = arith.constant 0.000000e+00 : f32
      %79 = vector.broadcast %cst_58 : f32 to vector<16x2xf32>
      %c0_59 = arith.constant 0 : index
      %c0_60 = arith.constant 0 : index
      %80 = vector.load %arg16[%c0_59, %c0_60] : memref<16x2xf32, #tpu.memory_space<vmem>>, vector<16x2xf32>
      tpu.vector_store %arg16[%c0_59, %c0_60], %79 {strides = array<i32>} : memref<16x2xf32, #tpu.memory_space<vmem>>, vector<16x2xf32>,
      %cst_61 = arith.constant 0.000000e+00 : f32
      %81 = vector.broadcast %cst_61 : f32 to vector<16x2xf32>
      %c0_62 = arith.constant 0 : index
      %c0_63 = arith.constant 0 : index
      %82 = vector.load %arg17[%c0_62, %c0_63] : memref<16x2xf32, #tpu.memory_space<vmem>>, vector<16x2xf32>
      tpu.vector_store %arg17[%c0_62, %c0_63], %81 {strides = array<i32>} : memref<16x2xf32, #tpu.memory_space<vmem>>, vector<16x2xf32>,
    } else {
    }
    %c0 = arith.constant 0 : index
    %c0_1 = arith.constant 0 : index
    %c0_2 = arith.constant 0 : index
    %3 = vector.load %arg2[%c0, %c0_1, %c0_2] : memref<1x8x128xf32, #tpu.memory_space<vmem>>, vector<1x8x128xf32>
    %4 = vector.shape_cast %3 : vector<1x8x128xf32> to vector<8x128xf32>
    %c0_3 = arith.constant 0 : index
    %c0_4 = arith.constant 0 : index
    %5 = vector.load %arg3[%c0_3, %c0_4] : memref<16x16xf32, #tpu.memory_space<vmem>>, vector<16x16xf32>
    %c0_5 = arith.constant 0 : index
    %c0_6 = arith.constant 0 : index
    %6 = vector.load %arg4[%c0_5, %c0_6] : memref<16x1xf32, #tpu.memory_space<vmem>>, vector<16x1xf32>
    %c0_7 = arith.constant 0 : index
    %c0_8 = arith.constant 0 : index
    %7 = vector.load %arg5[%c0_7, %c0_8] : memref<16x32xf32, #tpu.memory_space<vmem>>, vector<16x32xf32>
    %c0_9 = arith.constant 0 : index
    %c0_10 = arith.constant 0 : index
    %8 = vector.load %arg6[%c0_9, %c0_10] : memref<16x1xf32, #tpu.memory_space<vmem>>, vector<16x1xf32>
    %c0_11 = arith.constant 0 : index
    %c0_12 = arith.constant 0 : index
    %9 = vector.load %arg7[%c0_11, %c0_12] : memref<16x8xf32, #tpu.memory_space<vmem>>, vector<16x8xf32>
    %c0_13 = arith.constant 0 : index
    %c0_14 = arith.constant 0 : index
    %10 = vector.load %arg8[%c0_13, %c0_14] : memref<16x1xf32, #tpu.memory_space<vmem>>, vector<16x1xf32>
    %c0_15 = arith.constant 0 : index
    %c0_16 = arith.constant 0 : index
    %11 = vector.load %arg14[%c0_15, %c0_16] : memref<8x1xf32, #tpu.memory_space<vmem>>, vector<8x1xf32>
    %12 = tpu.concatenate %11, %4 in 1 : vector<8x1xf32>, vector<8x128xf32> -> vector<8x129xf32>
    %13 = vector.extract_strided_slice %12 {offsets = [0, 128], sizes = [8, 1], strides = [1, 1]} : vector<8x129xf32> to vector<8x1xf32>
    %c0_17 = arith.constant 0 : index
    %c0_18 = arith.constant 0 : index
    %14 = vector.load %arg14[%c0_17, %c0_18] : memref<8x1xf32, #tpu.memory_space<vmem>>, vector<8x1xf32>
    tpu.vector_store %arg14[%c0_17, %c0_18], %13 {strides = array<i32>} : memref<8x1xf32, #tpu.memory_space<vmem>>, vector<8x1xf32>,
    %15 = vector.extract_strided_slice %12 {offsets = [0, 0], sizes = [8, 128], strides = [1, 1]} : vector<8x129xf32> to vector<8x128xf32>
    %16 = vector.extract_strided_slice %12 {offsets = [0, 1], sizes = [8, 128], strides = [1, 1]} : vector<8x129xf32> to vector<8x128xf32>
    %17 = tpu.concatenate %15, %16 in 0 : vector<8x128xf32>, vector<8x128xf32> -> vector<16x128xf32>
    %cst = arith.constant dense<0.000000e+00> : vector<16x128xf32>
    %18 = tpu.matmul %5, %17, %cst {dimension_numbers = #tpu.dot_dimension_numbers<[1], [0], [0], [1], [0, 0, 1, 1], [], []>} : vector<16x16xf32>, vector<16x128xf32>, vector<16x128xf32> -> vector<16x128xf32>
    %19 = vector.broadcast %6 : vector<16x1xf32> to vector<16x128xf32>
    %20 = arith.addf %18, %19 : vector<16x128xf32>
    %cst_19 = arith.constant 0.000000e+00 : f32
    %21 = vector.broadcast %cst_19 : f32 to vector<16x128xf32>
    %22 = arith.maximumf %20, %21 : vector<16x128xf32>
    %c0_20 = arith.constant 0 : index
    %c0_21 = arith.constant 0 : index
    %23 = vector.load %arg15[%c0_20, %c0_21] : memref<16x1xf32, #tpu.memory_space<vmem>>, vector<16x1xf32>
    %24 = tpu.concatenate %23, %22 in 1 : vector<16x1xf32>, vector<16x128xf32> -> vector<16x129xf32>
    %25 = vector.extract_strided_slice %24 {offsets = [0, 128], sizes = [16, 1], strides = [1, 1]} : vector<16x129xf32> to vector<16x1xf32>
    %c0_22 = arith.constant 0 : index
    %c0_23 = arith.constant 0 : index
    %26 = vector.load %arg15[%c0_22, %c0_23] : memref<16x1xf32, #tpu.memory_space<vmem>>, vector<16x1xf32>
    tpu.vector_store %arg15[%c0_22, %c0_23], %25 {strides = array<i32>} : memref<16x1xf32, #tpu.memory_space<vmem>>, vector<16x1xf32>,
    %27 = vector.extract_strided_slice %24 {offsets = [0, 0], sizes = [16, 128], strides = [1, 1]} : vector<16x129xf32> to vector<16x128xf32>
    %28 = vector.extract_strided_slice %24 {offsets = [0, 1], sizes = [16, 128], strides = [1, 1]} : vector<16x129xf32> to vector<16x128xf32>
    %29 = tpu.concatenate %27, %28 in 0 : vector<16x128xf32>, vector<16x128xf32> -> vector<32x128xf32>
    %cst_24 = arith.constant dense<0.000000e+00> : vector<16x128xf32>
    %30 = tpu.matmul %7, %29, %cst_24 {dimension_numbers = #tpu.dot_dimension_numbers<[1], [0], [0], [1], [0, 0, 1, 1], [], []>} : vector<16x32xf32>, vector<32x128xf32>, vector<16x128xf32> -> vector<16x128xf32>
    %31 = vector.broadcast %8 : vector<16x1xf32> to vector<16x128xf32>
    %32 = arith.addf %30, %31 : vector<16x128xf32>
    %cst_25 = arith.constant 0.000000e+00 : f32
    %33 = vector.broadcast %cst_25 : f32 to vector<16x128xf32>
    %34 = arith.maximumf %32, %33 : vector<16x128xf32>
    %cst_26 = arith.constant dense<0.000000e+00> : vector<16x128xf32>
    %35 = tpu.matmul %9, %4, %cst_26 {dimension_numbers = #tpu.dot_dimension_numbers<[1], [0], [0], [1], [0, 0, 1, 1], [], []>} : vector<16x8xf32>, vector<8x128xf32>, vector<16x128xf32> -> vector<16x128xf32>
    %36 = vector.broadcast %10 : vector<16x1xf32> to vector<16x128xf32>
    %37 = arith.addf %35, %36 : vector<16x128xf32>
    %38 = arith.addf %34, %37 : vector<16x128xf32>
    %cst_27 = arith.constant 0.000000e+00 : f32
    %39 = vector.broadcast %cst_27 : f32 to vector<16x128xf32>
    %40 = arith.maximumf %38, %39 : vector<16x128xf32>
    %c0_28 = arith.constant 0 : index
    %c0_29 = arith.constant 0 : index
    %41 = vector.load %arg9[%c0_28, %c0_29] : memref<16x32xf32, #tpu.memory_space<vmem>>, vector<16x32xf32>
    %c0_30 = arith.constant 0 : index
    %c0_31 = arith.constant 0 : index
    %42 = vector.load %arg10[%c0_30, %c0_31] : memref<16x1xf32, #tpu.memory_space<vmem>>, vector<16x1xf32>
    %c0_32 = arith.constant 0 : index
    %c0_33 = arith.constant 0 : index
    %43 = vector.load %arg11[%c0_32, %c0_33] : memref<16x32xf32, #tpu.memory_space<vmem>>, vector<16x32xf32>
    %c0_34 = arith.constant 0 : index
    %c0_35 = arith.constant 0 : index
    %44 = vector.load %arg12[%c0_34, %c0_35] : memref<16x1xf32, #tpu.memory_space<vmem>>, vector<16x1xf32>
    %c0_36 = arith.constant 0 : index
    %c0_37 = arith.constant 0 : index
    %45 = vector.load %arg16[%c0_36, %c0_37] : memref<16x2xf32, #tpu.memory_space<vmem>>, vector<16x2xf32>
    %46 = tpu.concatenate %45, %40 in 1 : vector<16x2xf32>, vector<16x128xf32> -> vector<16x130xf32>
    %47 = vector.extract_strided_slice %46 {offsets = [0, 128], sizes = [16, 2], strides = [1, 1]} : vector<16x130xf32> to vector<16x2xf32>
    %c0_38 = arith.constant 0 : index
    %c0_39 = arith.constant 0 : index
    %48 = vector.load %arg16[%c0_38, %c0_39] : memref<16x2xf32, #tpu.memory_space<vmem>>, vector<16x2xf32>
    tpu.vector_store %arg16[%c0_38, %c0_39], %47 {strides = array<i32>} : memref<16x2xf32, #tpu.memory_space<vmem>>, vector<16x2xf32>,
    %49 = vector.extract_strided_slice %46 {offsets = [0, 0], sizes = [16, 128], strides = [1, 1]} : vector<16x130xf32> to vector<16x128xf32>
    %50 = vector.extract_strided_slice %46 {offsets = [0, 2], sizes = [16, 128], strides = [1, 1]} : vector<16x130xf32> to vector<16x128xf32>
    %51 = tpu.concatenate %49, %50 in 0 : vector<16x128xf32>, vector<16x128xf32> -> vector<32x128xf32>
    %cst_40 = arith.constant dense<0.000000e+00> : vector<16x128xf32>
    %52 = tpu.matmul %41, %51, %cst_40 {dimension_numbers = #tpu.dot_dimension_numbers<[1], [0], [0], [1], [0, 0, 1, 1], [], []>} : vector<16x32xf32>, vector<32x128xf32>, vector<16x128xf32> -> vector<16x128xf32>
    %53 = vector.broadcast %42 : vector<16x1xf32> to vector<16x128xf32>
    %54 = arith.addf %52, %53 : vector<16x128xf32>
    %cst_41 = arith.constant 0.000000e+00 : f32
    %55 = vector.broadcast %cst_41 : f32 to vector<16x128xf32>
    %56 = arith.maximumf %54, %55 : vector<16x128xf32>
    %c0_42 = arith.constant 0 : index
    %c0_43 = arith.constant 0 : index
    %57 = vector.load %arg17[%c0_42, %c0_43] : memref<16x2xf32, #tpu.memory_space<vmem>>, vector<16x2xf32>
    %58 = tpu.concatenate %57, %56 in 1 : vector<16x2xf32>, vector<16x128xf32> -> vector<16x130xf32>
    %59 = vector.extract_strided_slice %58 {offsets = [0, 128], sizes = [16, 2], strides = [1, 1]} : vector<16x130xf32> to vector<16x2xf32>
    %c0_44 = arith.constant 0 : index
    %c0_45 = arith.constant 0 : index
    %60 = vector.load %arg17[%c0_44, %c0_45] : memref<16x2xf32, #tpu.memory_space<vmem>>, vector<16x2xf32>
    tpu.vector_store %arg17[%c0_44, %c0_45], %59 {strides = array<i32>} : memref<16x2xf32, #tpu.memory_space<vmem>>, vector<16x2xf32>,
    %61 = vector.extract_strided_slice %58 {offsets = [0, 0], sizes = [16, 128], strides = [1, 1]} : vector<16x130xf32> to vector<16x128xf32>
    %62 = vector.extract_strided_slice %58 {offsets = [0, 2], sizes = [16, 128], strides = [1, 1]} : vector<16x130xf32> to vector<16x128xf32>
    %63 = tpu.concatenate %61, %62 in 0 : vector<16x128xf32>, vector<16x128xf32> -> vector<32x128xf32>
    %cst_46 = arith.constant dense<0.000000e+00> : vector<16x128xf32>
    %64 = tpu.matmul %43, %63, %cst_46 {dimension_numbers = #tpu.dot_dimension_numbers<[1], [0], [0], [1], [0, 0, 1, 1], [], []>} : vector<16x32xf32>, vector<32x128xf32>, vector<16x128xf32> -> vector<16x128xf32>
    %65 = vector.broadcast %44 : vector<16x1xf32> to vector<16x128xf32>
    %66 = arith.addf %64, %65 : vector<16x128xf32>
    %cst_47 = arith.constant 0.000000e+00 : f32
    %67 = vector.broadcast %cst_47 : f32 to vector<16x128xf32>
    %68 = arith.maximumf %66, %67 : vector<16x128xf32>
    %69 = arith.addf %68, %40 : vector<16x128xf32>
    %cst_48 = arith.constant 0.000000e+00 : f32
    %70 = vector.broadcast %cst_48 : f32 to vector<16x128xf32>
    %71 = arith.maximumf %69, %70 : vector<16x128xf32>
    %c0_49 = arith.constant 0 : index
    %c0_50 = arith.constant 0 : index
    %c0_51 = arith.constant 0 : index
    %72 = vector.load %arg13[%c0_49, %c0_50, %c0_51] : memref<1x16x128xf32, #tpu.memory_space<vmem>>, vector<1x16x128xf32>
    %73 = vector.shape_cast %72 : vector<1x16x128xf32> to vector<16x128xf32>
    %74 = vector.shape_cast %71 : vector<16x128xf32> to vector<1x16x128xf32>
    tpu.vector_store %arg13[%c0_49, %c0_50, %c0_51], %74 {strides = array<i32>} : memref<1x16x128xf32, #tpu.memory_space<vmem>>, vector<1x16x128xf32>,
    return
  }
  func.func @transform_0(%arg0: i32, %arg1: i32) -> (i32, i32, i32) {
    %c0_i32 = arith.constant 0 : i32
    %c0_i32_0 = arith.constant 0 : i32
    return %arg0, %c0_i32, %arg1 : i32, i32, i32
  }
  func.func @transform_1(%arg0: i32, %arg1: i32) -> (i32, i32) {
    %c0_i32 = arith.constant 0 : i32
    %c0_i32_0 = arith.constant 0 : i32
    %c0_i32_1 = arith.constant 0 : i32
    return %c0_i32, %c0_i32_0 : i32, i32
  }
  func.func @transform_2(%arg0: i32, %arg1: i32) -> (i32, i32) {
    %c0_i32 = arith.constant 0 : i32
    %c0_i32_0 = arith.constant 0 : i32
    %c0_i32_1 = arith.constant 0 : i32
    return %c0_i32, %c0_i32_0 : i32, i32
  }
  func.func @transform_3(%arg0: i32, %arg1: i32) -> (i32, i32) {
    %c0_i32 = arith.constant 0 : i32
    %c0_i32_0 = arith.constant 0 : i32
    %c0_i32_1 = arith.constant 0 : i32
    return %c0_i32, %c0_i32_0 : i32, i32
  }
  func.func @transform_4(%arg0: i32, %arg1: i32) -> (i32, i32) {
    %c0_i32 = arith.constant 0 : i32
    %c0_i32_0 = arith.constant 0 : i32
    %c0_i32_1 = arith.constant 0 : i32
    return %c0_i32, %c0_i32_0 : i32, i32
  }
  func.func @transform_5(%arg0: i32, %arg1: i32) -> (i32, i32) {
    %c0_i32 = arith.constant 0 : i32
    %c0_i32_0 = arith.constant 0 : i32
    %c0_i32_1 = arith.constant 0 : i32
    return %c0_i32, %c0_i32_0 : i32, i32
  }
  func.func @transform_6(%arg0: i32, %arg1: i32) -> (i32, i32) {
    %c0_i32 = arith.constant 0 : i32
    %c0_i32_0 = arith.constant 0 : i32
    %c0_i32_1 = arith.constant 0 : i32
    return %c0_i32, %c0_i32_0 : i32, i32
  }
  func.func @transform_7(%arg0: i32, %arg1: i32) -> (i32, i32) {
    %c0_i32 = arith.constant 0 : i32
    %c0_i32_0 = arith.constant 0 : i32
    %c0_i32_1 = arith.constant 0 : i32
    return %c0_i32, %c0_i32_0 : i32, i32
  }
  func.func @transform_8(%arg0: i32, %arg1: i32) -> (i32, i32) {
    %c0_i32 = arith.constant 0 : i32
    %c0_i32_0 = arith.constant 0 : i32
    %c0_i32_1 = arith.constant 0 : i32
    return %c0_i32, %c0_i32_0 : i32, i32
  }
  func.func @transform_9(%arg0: i32, %arg1: i32) -> (i32, i32) {
    %c0_i32 = arith.constant 0 : i32
    %c0_i32_0 = arith.constant 0 : i32
    %c0_i32_1 = arith.constant 0 : i32
    return %c0_i32, %c0_i32_0 : i32, i32
  }
  func.func @transform_10(%arg0: i32, %arg1: i32) -> (i32, i32) {
    %c0_i32 = arith.constant 0 : i32
    %c0_i32_0 = arith.constant 0 : i32
    %c0_i32_1 = arith.constant 0 : i32
    return %c0_i32, %c0_i32_0 : i32, i32
  }
  func.func @transform_11(%arg0: i32, %arg1: i32) -> (i32, i32, i32) {
    %c0_i32 = arith.constant 0 : i32
    %c0_i32_0 = arith.constant 0 : i32
    return %arg0, %c0_i32, %arg1 : i32, i32, i32
  }
}

</mosaic_0001>

<bundles_post_ra>
// kernel: tpu_custom_call.1
= control target key start
LH: loop header
LB: loop body
LE: loop exit
PB: predicated region body
PF: predicated region fallthrough
CT: control target
= control target key end

     0   :  { %s1666_s0 = inlined_call_operand.vmem [shape: f32[2,8,128], index: 0, kind: input, shape index: {}]   ;;  %s1667_s1 = inlined_call_operand.vmem [shape: f32[16,16], index: 1, kind: input, shape index: {}]   ;;  %s1668_s2 = inlined_call_operand.vmem [shape: f32[16,1], index: 2, kind: input, shape index: {}]   ;;  %s1669_s3 = inlined_call_operand.vmem [shape: f32[16,32], index: 3, kind: input, shape index: {}]   ;;  %s1670_s4 = inlined_call_operand.vmem [shape: f32[16,1], index: 4, kind: input, shape index: {}]   ;;  %s1671_s5 = inlined_call_operand.vmem [shape: f32[16,8], index: 5, kind: input, shape index: {}]   ;;  %s1672_s6 = inlined_call_operand.vmem [shape: f32[16,1], index: 6, kind: input, shape index: {}]   ;;  %s1673_s7 = inlined_call_operand.vmem [shape: f32[16,32], index: 7, kind: input, shape index: {}]   ;;  %s1674_s8 = inlined_call_operand.vmem [shape: f32[16,1], index: 8, kind: input, shape index: {}]   ;;  %s1675_s9 = inlined_call_operand.vmem [shape: f32[16,32], index: 9, kind: input, shape index: {}]   ;;  %s1676_s10 = inlined_call_operand.vmem [shape: f32[16,1], index: 10, kind: input, shape index: {}]   ;;  %s1677_s11 = inlined_call_operand.hbm [shape: f32[2,16,128], index: 11, kind: output, shape index: {}]  }
   0x1   :  { %1678 = sst [smem:[#allocation9_spill]] %s1666_s0 }
   0x2   :  { %1679 = sst [smem:[#allocation10_spill]] %s1667_s1 }
   0x3   :  { %16 = vsyncpa [#allocation7], 0 }
   0x4   :  { %18 = vsyncpa [#allocation7 + $0x1], 0  ;;  %s1414_s17 = smov 0   ;;  %s1416_s18 = smov 0  }
   0x5   :  { %s1418_s19 = smov 0   ;;  %s1420_s20 = smov 0  }
   0x6   :  { %s1422_s21 = smov 0   ;;  %s1424_s22 = smov 0  }
   0x7 LB: > { %s1109_s23 = sadd.s32 4294967295, %s1343_s22   ;;  %s1110_s24 = sadd.s32 4294967294, %s1343_s22   ;;  %s1343_s22 = sphi %s1424_s22, %s24_s22   ;;  %s1339_s21 = sphi %s1422_s21, %s1688_s21   ;;  %s1335_s20 = sphi %s1420_s20, %s1687_s20   ;;  %s1331_s19 = sphi %s1418_s19, %s1686_s19   ;;  %s1327_s18 = sphi %s1416_s18, %s1685_s18   ;;  %s1323_s17 = sphi %s1414_s17, %s1684_s17  }
   0x8   : > { %s36_s25 = sadd.s32 1, %s1339_s21  ;;  %s283_s26 = sadd.s32 1, %s1331_s19 }
   0x9   : > { %p38_p0 = scmp.ge.s32.totalorder %s36_s25, 2  ;;  %p293_p1 = scmp.ne.s32.totalorder %s1331_s19, %s1327_s18 }
   0xa   : > { %p294_p2 = scmp.eq.s32.totalorder %s1109_s23, 1  ;;  %p299_p3 = scmp.ne.s32.totalorder %s1327_s18, %s1323_s17 }
   0xb   : > { %s1690_s25 = smov (%p38_p0, %s36_s25), 0  ;;  %p300_p5 = scmp.eq.s32.totalorder %s1110_s24, 1 }
   0xc   : > { %p1454_p4 = por %p294_p2, %p293_p1  ;;  %s278_s28 = ssub.s32 %s1339_s21, %s1690_s25 }
   0xd   : > { %p1113_p6 = scmp.ge.s32.totalorder %s1343_s22, 1  ;;  %p281_p7 = scmp.eq.s32.totalorder %s278_s28, 0 }
   0xe   : > { %p1461_p8 = por %p300_p5, %p299_p3  ;;  %p358_p9 = scmp.lt.s32.totalorder %s1343_s22, 3 }
   0xf   : > { %s1467_s30 = scalar_select %p281_p7, %s1331_s19, %s283_s26  }
  0x10   : > { %p359_p10 = pnand %p1113_p6, %p358_p9 }
  0x11   : > { %p400_p11 = scmp.lt.s32.totalorder (!%p359_p10), %s1335_s20, 1  ;;  %s1682_s0 = sld [smem:[#allocation9_spill]] (!%p359_p10) }
  0x12   : > { %362 = sbr.rel (%p359_p10) target bundleno = 1802 (0x70a), region = 64  ;;  %s1346_s23 = smov (!%p359_p10), 1  }
  0x13   : > { %s1683_s1 = sld [smem:[#allocation10_spill]] (!%p359_p10)  ;;  %s1348_s28 = smov (!%p359_p10), 127  }
  0x14   : > { %s1349_s24 = smov (!%p359_p10), 2   ;;  %s397_s26 = sand.u32 (!%p359_p10), 1, %s1327_s18  }
  0x15   : > { %s1131_s15 = sshll.u32 (!%p359_p10), %s1335_s20, 8 }
  0x17   : > { %vm411_vm0 = vcmask 7168   ;;  %v1345_v0 = vmov 0.0   ;;  %s401_s12 = scalar_select %p400_p11, %s1335_s20, 1  ;;  %vm459_vm1 = vcmask 130048   ;;  %v1347_v3 = vmov 0   ;;  %v424_v7 = vld [vmem:[%s1668_s2 + $0x8] sm:$0xff] }
  0x18   : > { %412 = vst.msk [vmem:[#allocation2] sm:$0xff] %vm411_vm0, %v1345_v0  ;;  %413 = vst.msk [vmem:[#allocation3] sm:$0xff] %vm411_vm0, %v1345_v0  ;;  %1265 = vset.pattern.permute.xlu1 %v1347_v3  ;;  %1266 = vset.pattern.permute.xlu0 %v1347_v3  ;;  %v423_v8 = vld [vmem:[%s1668_s2] sm:$0xff]  ;;  %vm446_vm2 = vcmask 1039360   ;;  %vm675_vm3 = vcmask 64512   ;;  %v430_v14 = vld [vmem:[%s1671_s5 + $0x8] sm:$0xff] }
  0x19   : > { %414 = vst.msk [vmem:[#allocation3 + $0x8] sm:$0xff] %vm411_vm0, %v1345_v0  ;;  %s1115_s13 = sshll.u32 %s401_s12, 3  ;;  %v421_v2 = vld [vmem:[%s1683_s1] sm:$0xff]  ;;  %v422_v12 = vld [vmem:[%s1683_s1 + $0x8] sm:$0xff]  ;;  %vm581_vm4 = vcmask 261120   ;;  %vm415_vm5 = vcmask 15360  }
  0x1a   : > { %s406_s16 = scalar_lea.vmem %s1682_s0, %s1115_s13  ;;  %1161 = vmatprep.mubr.msk.f32.mxu0 %vm459_vm1, %v421_v2  ;;  %v429_v13 = vld [vmem:[%s1671_s5] sm:$0xff]  ;;  %v428_v31 = vld [vmem:[%s1670_s4 + $0x8] sm:$0xff]  ;;  %417 = vst.msk [vmem:[#allocation4 + $0x8] sm:$0xff] %vm415_vm5, %v1345_v0  ;;  %416 = vst.msk [vmem:[#allocation4] sm:$0xff] %vm415_vm5, %v1345_v0  ;;  %s1350_s13 = smov 126   ;;  %vm794_vm6 = vcmask 1031168  }
  0x1b   : > { %v420_v1 = vld [vmem:[%s406_s16] sm:$0xff]  ;;  %v432_v33 = vld [vmem:[%s1672_s6 + $0x8] sm:$0xff]  ;;  %418 = vst.msk [vmem:[#allocation5] sm:$0xff] %vm415_vm5, %v1345_v0  ;;  %419 = vst.msk [vmem:[#allocation5 + $0x8] sm:$0xff] %vm415_vm5, %v1345_v0  ;;  %s1114_s12 = sshll.u32 %s397_s26, 4 }
  0x1c   : > { %435 = vrot.lane.b32.xlu0 %v420_v1, %s1346_s23  ;;  %v425_v24 = vld [vmem:[%s1669_s3] sm:$0xff]  ;;  %v426_v40 = vld [vmem:[%s1669_s3 + $0x8] sm:$0xff]  ;;  %s399_s14 = scalar_lea.vmem [#allocation6], %s1114_s12  ;;  %s1351_s12 = smov [#allocation6]  }
  0x1d   : > { %1172 = vmatprep.mubr.msk.f32.mxu1 %vm581_vm4, %v425_v24  ;;  %v427_v30 = vld [vmem:[%s1670_s4] sm:$0xff]  ;;  %v764_v3 = vld [vmem:[%s1674_s8 + $0x8] sm:$0xff]  ;;  %s1271_s0 = sshll.u32 %s1351_s12, 4  ;;  %s1272_s0 = int_to_ptr.vmem [resolvable:$false] %s1271_s0 }
  0x1e   : > { %v431_v32 = vld [vmem:[%s1672_s6] sm:$0xff]  ;;  %s1273_s1 = scalar_lea.vmem %s1272_s0, 512 }
  0x1f   : > { %v433_v4 = vld [vmem:[#allocation2] sm:$0xff]  ;;  %v543_v27 = vld [vmem:[#allocation3] sm:$0xff] }
  0x20   : > { %v544_v23 = vld [vmem:[#allocation3 + $0x8] sm:$0xff]  ;;  %v761_v60 = vld [vmem:[%s1673_s7] sm:$0xff] }
  0x21   : > { %v770_v59 = vld [vmem:[#allocation4 + $0x8] sm:$0xff]  ;;  %v769_v62 = vld [vmem:[#allocation4] sm:$0xff] }
  0x22   : > { %v763_v2 = vld [vmem:[%s1674_s8] sm:$0xff] }
  0x8e   : > { %v436_v5 = vpop.permute.xlu0 %435 }
  0x8f   : > { %440 = vst.msk [vmem:[#allocation2] sm:$0xff] %vm411_vm0, %v436_v5  ;;  %444 = vrot.lane.b32.xlu1 %v436_v5, %s1348_s28  ;;  %v439_v6 = vsel %vm411_vm0, %v433_v4, %v436_v5 }
  0x90   : > { %442 = vrot.lane.b32.xlu0 %v439_v6, %s1348_s28 }
  0x93   : > { %456 = vperm.xlu1 %1265, %v424_v7  }
  0x94   : > { %451 = vperm.xlu0 %1266, %v423_v8  }
 0x101   : > { %v445_v9 = vpop.permute.xlu1 %444 }
 0x102   : > { %v443_v10 = vpop.permute.xlu0 %442 }
 0x103   : > { %v447_v11 = vsel %vm446_vm2, %v443_v10, %v445_v9  ;;  %v762_v10 = vld [vmem:[%s1673_s7 + $0x8] sm:$0xff] }
 0x104   : > { %1157 = vmatprep.subr.mxu0 %v447_v11 }
 0x105   : > { %1158 = vmatpush3.msra.mxu0 %v447_v11 }
 0x106   : > { %1159 = vmatprep.subr.mxu0 %v439_v6 }
 0x107   : > { %1160 = vmatpush3.msra.mxu0 %v439_v6 }
 0x108   : > { %1162 = vmatmul.mubr.msk.f32.vlgmr.msra.gmra.mxu0 %vm459_vm1, %v422_v12  ;;  %1175 = vmatprep.subr.mxu0 %v420_v1 }
 0x109   : > { %1176 = vmatpush3.msra.mxu0 %v420_v1  ;;  %1177 = vmatprep.mubr.msk.f32.mxu0 %vm675_vm3, %v429_v13 }
 0x10c   : > { %1178 = vmatmul.mubr.msk.f32.vlgmr.msra.gmra.mxu0 %vm675_vm3, %v430_v14 }
 0x10d   : > { %1188 = vmatprep.mubr.msk.f32.mxu0 %vm581_vm4, %v761_v60 }
 0x10e   : > { %v457_v15 = vpop.permute.xlu1 %456 }
 0x10f   : > { %v452_v17 = vpop.permute.xlu0 %451 }
 0x1c8   : > { %v1163_v16 = vpop.f32.mrf.mxu0 }
 0x1c9   : > { %v538_v18 = vadd.f32 %v1163_v16, %v457_v15 }
 0x1ca   : > { %v532_v19 = vpop.f32.mrf.mxu0 }
 0x1cb   : > { %v542_v20 = vmax.f32 %v538_v18, 0.0  ;;  %v533_v21 = vadd.f32 %v532_v19, %v452_v17  ;;  %v893_v19 = vld [vmem:[#allocation5 + $0x8] sm:$0xff] }
 0x1cc   : > { %v1179_v43 = vpop.f32.mrf.mxu0 }
 0x1cd   : > { %549 = vrot.lane.b32.xlu1 %v542_v20, %s1346_s23  ;;  %v541_v22 = vmax.f32 %v533_v21, 0.0  ;;  %v765_v20 = vld [vmem:[%s1675_s9] sm:$0xff] }
 0x1ce   : > { %v748_v46 = vpop.f32.mrf.mxu0 }
 0x1d1   : > { %547 = vrot.lane.b32.xlu1 %v541_v22, %s1346_s23  ;;  %v892_v22 = vld [vmem:[#allocation5] sm:$0xff]  ;;  %s1621_s23 = scalar_lea.sflag [#allocation7], %s397_s26 }
 0x23f   : > { %v550_v25 = vpop.permute.xlu1 %549 }
 0x240   : > { %556 = vst.msk [vmem:[#allocation3 + $0x8] sm:$0xff] %vm411_vm0, %v550_v25  ;;  %565 = vrot.lane.b32.xlu1 %v550_v25, %s1348_s28  ;;  %v554_v26 = vsel %vm411_vm0, %v544_v23, %v550_v25 }
 0x241   : > { %563 = vrot.lane.b32.xlu0 %v554_v26, %s1348_s28 }
 0x243   : > { %v548_v28 = vpop.permute.xlu1 %547 }
 0x244   : > { %555 = vst.msk [vmem:[#allocation3] sm:$0xff] %vm411_vm0, %v548_v28  ;;  %561 = vrot.lane.b32.xlu1 %v548_v28, %s1348_s28  ;;  %v553_v29 = vsel %vm411_vm0, %v543_v27, %v548_v28  ;;  %v767_v27 = vld [vmem:[%s1676_s10] sm:$0xff] }
 0x245   : > { %559 = vrot.lane.b32.xlu0 %v553_v29, %s1348_s28 }
 0x248   : > { %573 = vperm.xlu1 %1265, %v427_v30  }
 0x249   : > { %578 = vperm.xlu0 %1266, %v428_v31  }
 0x24c   : > { %667 = vperm.xlu1 %1265, %v431_v32  }
 0x24d   : > { %672 = vperm.xlu0 %1266, %v432_v33  }
 0x2b2   : > { %v566_v34 = vpop.permute.xlu1 %565 }
 0x2b3   : > { %v564_v35 = vpop.permute.xlu0 %563 }
 0x2b4   : > { %v568_v36 = vsel %vm446_vm2, %v564_v35, %v566_v34  ;;  %v766_v34 = vld [vmem:[%s1675_s9 + $0x8] sm:$0xff] }
 0x2b5   : > { %1164 = vmatprep.subr.mxu1 %v568_v36 }
 0x2b6   : > { %1165 = vmatpush3.msra.mxu1 %v568_v36  ;;  %v562_v37 = vpop.permute.xlu1 %561 }
 0x2b7   : > { %v560_v38 = vpop.permute.xlu0 %559 }
 0x2b8   : > { %v567_v39 = vsel %vm446_vm2, %v560_v38, %v562_v37 }
 0x2b9   : > { %1166 = vmatprep.subr.mxu1 %v567_v39 }
 0x2ba   : > { %1167 = vmatpush3.msra.mxu1 %v567_v39 }
 0x2bb   : > { %1168 = vmatprep.subr.mxu1 %v554_v26 }
 0x2bc   : > { %1169 = vmatpush3.msra.mxu1 %v554_v26  ;;  %v768_v26 = vld [vmem:[%s1676_s10 + $0x8] sm:$0xff] }
 0x2bd   : > { %1170 = vmatprep.subr.mxu1 %v553_v29 }
 0x2be   : > { %1171 = vmatpush3.msra.mxu1 %v553_v29 }
 0x2bf   : > { %1173 = vmatmul.mubr.msk.f32.vlgmr.msra.gmra.mxu1 %vm581_vm4, %v426_v40 }
 0x2c0   : > { %1199 = vmatprep.mubr.msk.f32.mxu1 %vm581_vm4, %v765_v20 }
 0x2c3   : > { %v574_v42 = vpop.permute.xlu1 %573 }
 0x2c4   : > { %v579_v41 = vpop.permute.xlu0 %578 }
 0x2c7   : > { %v668_v48 = vpop.permute.xlu1 %667 }
 0x2c8   : > { %v673_v44 = vpop.permute.xlu0 %672  ;;  %v749_v53 = vadd.f32 %v748_v46, %v668_v48 }
 0x2c9   : > { %v754_v50 = vadd.f32 %v1179_v43, %v673_v44 }
 0x37f   : > { %v1174_v45 = vpop.f32.mrf.mxu1 }
 0x380   : > { %v660_v47 = vadd.f32 %v1174_v45, %v579_v41 }
 0x381   : > { %v654_v49 = vpop.f32.mrf.mxu1 }
 0x382   : > { %v664_v51 = vmax.f32 %v660_v47, 0.0  ;;  %v655_v52 = vadd.f32 %v654_v49, %v574_v42 }
 0x384   : > { %v1546_v54 = vadd.f32 %v754_v50, %v664_v51  ;;  %v663_v55 = vmax.f32 %v655_v52, 0.0 }
 0x386   : > { %v760_v56 = vmax.f32 %v1546_v54, 0.0  ;;  %v1549_v57 = vadd.f32 %v749_v53, %v663_v55 }
 0x388   : > { %v759_v58 = vmax.f32 %v1549_v57, 0.0  ;;  %775 = vrot.lane.b32.xlu0 %v760_v56, %s1349_s24 }
 0x38a   : > { %773 = vrot.lane.b32.xlu1 %v759_v58, %s1349_s24 }
 0x3fa   : > { %v776_v61 = vpop.permute.xlu0 %775 }
 0x3fb   : > { %783 = vst.msk [vmem:[#allocation4 + $0x8] sm:$0xff] %vm415_vm5, %v776_v61  ;;  %792 = vrot.lane.b32.xlu1 %v776_v61, %s1350_s13  ;;  %v781_v63 = vsel %vm415_vm5, %v770_v59, %v776_v61 }
 0x3fc   : > { %790 = vrot.lane.b32.xlu0 %v781_v63, %s1350_s13  ;;  %v774_v0 = vpop.permute.xlu1 %773 }
 0x3fd   : > { %782 = vst.msk [vmem:[#allocation4] sm:$0xff] %vm415_vm5, %v774_v0  ;;  %v780_v1 = vsel %vm415_vm5, %v769_v62, %v774_v0 }
 0x3ff   : > { %788 = vrot.lane.b32.xlu1 %v774_v0, %s1350_s13 }
 0x400   : > { %786 = vrot.lane.b32.xlu0 %v780_v1, %s1350_s13 }
 0x403   : > { %801 = vperm.xlu1 %1265, %v763_v2  }
 0x404   : > { %806 = vperm.xlu0 %1266, %v764_v3  }
 0x46d   : > { %v793_v4 = vpop.permute.xlu1 %792 }
 0x46e   : > { %v791_v5 = vpop.permute.xlu0 %790 }
 0x46f   : > { %v796_v6 = vsel %vm794_vm6, %v791_v5, %v793_v4 }
 0x470   : > { %1180 = vmatprep.subr.mxu0 %v796_v6 }
 0x471   : > { %1181 = vmatpush3.msra.mxu0 %v796_v6  ;;  %v789_v7 = vpop.permute.xlu1 %788 }
 0x472   : > { %v787_v8 = vpop.permute.xlu0 %786 }
 0x473   : > { %v795_v9 = vsel %vm794_vm6, %v787_v8, %v789_v7 }
 0x474   : > { %1182 = vmatprep.subr.mxu0 %v795_v9 }
 0x475   : > { %1183 = vmatpush3.msra.mxu0 %v795_v9 }
 0x476   : > { %1184 = vmatprep.subr.mxu0 %v781_v63 }
 0x477   : > { %1185 = vmatpush3.msra.mxu0 %v781_v63 }
 0x478   : > { %1186 = vmatprep.subr.mxu0 %v780_v1 }
 0x479   : > { %1187 = vmatpush3.msra.mxu0 %v780_v1 }
 0x47a   : > { %1189 = vmatmul.mubr.msk.f32.vlgmr.msra.gmra.mxu0 %vm581_vm4, %v762_v10 }
 0x47e   : > { %v802_v14 = vpop.permute.xlu1 %801 }
 0x47f   : > { %v807_v11 = vpop.permute.xlu0 %806 }
 0x53a   : > { %v1190_v12 = vpop.f32.mrf.mxu0 }
 0x53b   : > { %v887_v13 = vadd.f32 %v1190_v12, %v807_v11 }
 0x53c   : > { %v881_v15 = vpop.f32.mrf.mxu0 }
 0x53d   : > { %v891_v16 = vmax.f32 %v887_v13, 0.0  ;;  %v882_v17 = vadd.f32 %v881_v15, %v802_v14 }
 0x53f   : > { %v890_v18 = vmax.f32 %v882_v17, 0.0  ;;  %898 = vrot.lane.b32.xlu0 %v891_v16, %s1349_s24 }
 0x541   : > { %896 = vrot.lane.b32.xlu1 %v890_v18, %s1349_s24  ;;  %s1034_s24 = sshll.u32 %s399_s14, 4  ;;  %s1614_s24 = int_to_ptr.vmem [resolvable:$true] %s1034_s24 }
 0x542   : > { %s1267_s20 = scalar_lea.vmem %s1614_s24, 256  ;;  %p1274_p1 = scmp.lt.s32.totalorder %s1614_s24, %s1272_s0 }
 0x543   : > { %p1268_p12 = scmp.ne.s32.totalorder %s1614_s24, %s1267_s20  ;;  %p1275_p2 = scmp.lt.s32.totalorder %s1273_s1, %s1267_s20 }
 0x545   : > { %p1269_p13 = pnand %p1268_p12, %p1454_p4  ;;  %p1276_p3 = por %p1275_p2, %p1274_p1 }
 0x547   : > { %p1270_p0 = pneg %p1269_p13 }
 0x549   : > { %p1277_p5 = pnand %p1276_p3, %p1270_p0 }
 0x5b1   : > { %v899_v21 = vpop.permute.xlu0 %898 }
 0x5b2   : > { %905 = vst.msk [vmem:[#allocation5 + $0x8] sm:$0xff] %vm415_vm5, %v899_v21  ;;  %914 = vrot.lane.b32.xlu1 %v899_v21, %s1350_s13  ;;  %v903_v23 = vsel %vm415_vm5, %v893_v19, %v899_v21 }
 0x5b3   : > { %912 = vrot.lane.b32.xlu0 %v903_v23, %s1350_s13  ;;  %v897_v24 = vpop.permute.xlu1 %896 }
 0x5b4   : > { %904 = vst.msk [vmem:[#allocation5] sm:$0xff] %vm415_vm5, %v897_v24  ;;  %v902_v25 = vsel %vm415_vm5, %v892_v22, %v897_v24 }
 0x5b6   : > { %910 = vrot.lane.b32.xlu1 %v897_v24, %s1350_s13 }
 0x5b7   : > { %908 = vrot.lane.b32.xlu0 %v902_v25, %s1350_s13  ;;  %s1619_s13 = scalar_lea.hbm %s1677_s11, %s1131_s15 }
 0x5ba   : > { %927 = vperm.xlu1 %1265, %v768_v26  }
 0x5bb   : > { %922 = vperm.xlu0 %1266, %v767_v27  }
 0x624   : > { %v915_v28 = vpop.permute.xlu1 %914 }
 0x625   : > { %v913_v29 = vpop.permute.xlu0 %912 }
 0x626   : > { %v917_v30 = vsel %vm794_vm6, %v913_v29, %v915_v28 }
 0x627   : > { %1191 = vmatprep.subr.mxu1 %v917_v30 }
 0x628   : > { %1192 = vmatpush3.msra.mxu1 %v917_v30  ;;  %v911_v31 = vpop.permute.xlu1 %910 }
 0x629   : > { %v909_v32 = vpop.permute.xlu0 %908 }
 0x62a   : > { %v916_v33 = vsel %vm794_vm6, %v909_v32, %v911_v31 }
 0x62b   : > { %1193 = vmatprep.subr.mxu1 %v916_v33 }
 0x62c   : > { %1194 = vmatpush3.msra.mxu1 %v916_v33 }
 0x62d   : > { %1195 = vmatprep.subr.mxu1 %v903_v23 }
 0x62e   : > { %1196 = vmatpush3.msra.mxu1 %v903_v23 }
 0x62f   : > { %1197 = vmatprep.subr.mxu1 %v902_v25 }
 0x630   : > { %1198 = vmatpush3.msra.mxu1 %v902_v25 }
 0x631   : > { %1200 = vmatmul.mubr.msk.f32.vlgmr.msra.gmra.mxu1 %vm581_vm4, %v766_v34 }
 0x635   : > { %v928_v35 = vpop.permute.xlu1 %927 }
 0x636   : > { %v923_v38 = vpop.permute.xlu0 %922 }
 0x6f1   : > { %v1201_v36 = vpop.f32.mrf.mxu1 }
 0x6f2   : > { %v1008_v37 = vadd.f32 %v1201_v36, %v928_v35 }
 0x6f3   : > { %v1002_v39 = vpop.f32.mrf.mxu1 }
 0x6f4   : > { %v1012_v40 = vmax.f32 %v1008_v37, 0.0  ;;  %v1003_v41 = vadd.f32 %v1002_v39, %v923_v38 }
 0x6f6   : > { %v1014_v42 = vadd.f32 %v1012_v40, %v760_v56  ;;  %v1011_v43 = vmax.f32 %v1003_v41, 0.0 }
 0x6f8   : > { %v1016_v44 = vmax.f32 %v1014_v42, 0.0  ;;  %v1013_v45 = vadd.f32 %v1011_v43, %v759_v58 }
 0x6fa   : > { %1018 = vst [vmem:[%s399_s14 + $0x8] sm:$0xff] %v1016_v44  ;;  %v1015_v46 = vmax.f32 %v1013_v45, 0.0 }
 0x6fc   : > { %1017 = vst [vmem:[%s399_s14] sm:$0xff] %v1015_v46 }
 0x6fd   : > { %1280 = shalt.err (!%p1277_p5)
}
 0x6fe   : > { %s1281_s26 = scalar_lea.hbm %s1619_s13, 256  ;;  %s1285_s16 = scalar_lea.hbm %s1677_s11, 512 }
 0x6ff   : > { %p1282_p6 = scmp.ne.s32.totalorder %s1619_s13, %s1281_s26  ;;  %p1286_p10 = scmp.lt.s32.totalorder %s1619_s13, %s1677_s11 }
 0x700   : > { %p1287_p11 = scmp.lt.s32.totalorder %s1285_s16, %s1281_s26 }
 0x701   : > { %p1283_p7 = pnand %p1282_p6, %p1454_p4 }
 0x702   : > { %p1288_p12 = por %p1287_p11, %p1286_p10 }
 0x703   : > { %p1284_p9 = pneg %p1283_p7 }
 0x705   : > { %p1289_p13 = pnand %p1288_p12, %p1284_p9 }
 0x707   : > { %1292 = shalt.err (!%p1289_p13)
}
 0x708   : > { %s1352_s0 = smov 128   ;;  %s1353_s1 = smov 8  }
 0x709   : > { %1202 = dma.vmem_to_hbm [thread:$0]  (%p1454_p4), %s1614_s24, 256, %s1619_s13, %s1621_s23, %s1352_s0, %s1352_s0, %s1353_s1  }
 0x70a PF: > { %p1208_p0 = scmp.ge.s32.totalorder %s1343_s22, 2  ;;  %s1049_s20 = sand.u32 1, %s1323_s17  }
 0x70b   : > { %s1050_s26 = scalar_lea.sflag [#allocation7], %s1049_s20 }
 0x70c   : > { %p1205_p1 = pnand %p1208_p0, %p1461_p8 }
 0x70e   : > { %p1206_p2 = pneg %p1205_p1 }
 0x710   : > { %1318 = dma.done.wait (%p1206_p2), %s1050_s26, 256  }
 0x711   : > { %1320 = vsyncadd (%p1206_p2), %s1050_s26, 4294967040  ;;  %s24_s22 = sadd.s32 1, %s1343_s22   ;;  %s1684_s17 = smov %s1327_s18 }
 0x712   : > { %p21_p3 = scmp.ge.s32.totalorder %s24_s22, 4   ;;  %s1685_s18 = smov %s1331_s19 }
 0x713   : > { %s1686_s19 = smov %s1467_s30  ;;  %s1687_s20 = smov %s1339_s21 }
 0x714   : > { %s1688_s21 = smov %s1690_s25  ;;  %23 = sbr.rel (!%p21_p3) target bundleno = 7 (0x7), region = 103 }
 0x719   :  { %1055 = vsyncpa [#allocation7], 1 }
 0x71a   :  { %1057 = vsyncpa [#allocation7 + $0x1], 1 }

</bundles_post_ra>
